<compile_context>
chip_gen: v5e
topology: v5e:2x2
jax: 0.10.0
libtpu: 0.0.40
codegen_flags: <defaults>
</compile_context>

<pallas_src>
import jax
import jax.numpy as jnp
import numpy as np
from jax.experimental import pallas as pl
from jax.experimental.pallas import tpu as pltpu


# ---------------------------------------------------------------------------
# Pallas kernel
# ---------------------------------------------------------------------------
def _embed_kernel(patches_ref, w_ref, b_ref, pos_ref, o_ref):
    """Fused patch-embedding matmul + conv bias + position embedding.

    patches_ref: (1, tp, D)   one batch element, tp patch rows, D = C*P*P
    w_ref:       (D, H)       conv weight repacked (grid-invariant block)
    b_ref:       (1, H)       conv bias
    pos_ref:     (tp, H)      position-embedding rows for this patch tile
    o_ref:       (1, tp, H)
    """
    acc = jnp.dot(patches_ref[0], w_ref[...],
                  preferred_element_type=jnp.float32)          # MXU, f32 acc
    acc = acc + b_ref[...].astype(jnp.float32) + pos_ref[...].astype(jnp.float32)
    o_ref[0] = acc.astype(o_ref.dtype)


# ---------------------------------------------------------------------------
# Wrapper (plain-JAX glue: patch extraction, weight repack, pallas_call setup)
# ---------------------------------------------------------------------------
def kan_siglip_embeddings_forward(params, pixel_values, *, patch_size, tp=None):
    conv_w = params["conv_w"]      # (H, C, P, P)
    conv_b = params["conv_b"]      # (H,)
    pos_emb = params["pos_emb"]    # (num_patches, H)

    B, C, Himg, Wimg = pixel_values.shape
    P = patch_size
    H = conv_w.shape[0]
    nH, nW = Himg // P, Wimg // P
    num_patches = nH * nW
    D = C * P * P

    # Patch extraction (layout plumbing):
    # (B,C,Himg,Wimg) -> (B,C,nH,P,nW,P) -> (B,nH,nW,C,P,P) -> (B,NP,D)
    patches = pixel_values.reshape(B, C, nH, P, nW, P)
    patches = patches.transpose(0, 2, 4, 1, 3, 5).reshape(B, num_patches, D)

    # Conv weight (H, C, P, P) -> (D, H), matching the (C,P,P) flatten order.
    w = conv_w.reshape(H, D).T
    bias = conv_b.reshape(1, H)

    # Patch tile: full block unless num_patches is 8-aligned and large.
    if tp is None:
        tp = min(num_patches, 256) if num_patches % 8 == 0 else num_patches

    grid = (B, pl.cdiv(num_patches, tp))
    return pl.pallas_call(
        _embed_kernel,
        out_shape=jax.ShapeDtypeStruct((B, num_patches, H), pixel_values.dtype),
        grid_spec=pltpu.PrefetchScalarGridSpec(
            num_scalar_prefetch=0,
            grid=grid,
            in_specs=[
                pl.BlockSpec((1, tp, D), lambda b, i: (b, i, 0)),   # patches
                pl.BlockSpec((D, H), lambda b, i: (0, 0)),          # weight
                pl.BlockSpec((1, H), lambda b, i: (0, 0)),          # bias
                pl.BlockSpec((tp, H), lambda b, i: (i, 0)),         # pos emb
            ],
            out_specs=pl.BlockSpec((1, tp, H), lambda b, i: (b, i, 0)),
        ),
        compiler_params=pltpu.CompilerParams(
            dimension_semantics=("parallel", "parallel")),
    )(patches, w, bias, pos_emb)


# ---------------------------------------------------------------------------
# Parameter init (deterministic, in-script, matching torch defaults' shapes)
# ---------------------------------------------------------------------------
def init_params(key, hidden_size, num_channels, image_size, patch_size):
    num_patches = (image_size // patch_size) ** 2
    fan_in = num_channels * patch_size * patch_size
    bound = 1.0 / np.sqrt(fan_in)
    k_w, k_b, k_p = jax.random.split(key, 3)
    return {
        # Conv2d(C -> H, kernel=P, stride=P)
        "conv_w": jax.random.uniform(
            k_w, (hidden_size, num_channels, patch_size, patch_size),
            jnp.float32, -bound, bound),
        "conv_b": jax.random.uniform(
            k_b, (hidden_size,), jnp.float32, -bound, bound),
        # nn.Embedding(num_patches, H) ~ N(0, 1)
        "pos_emb": jax.random.normal(k_p, (num_patches, hidden_size),
                                     jnp.float32),
    }


# Pure-JAX reference (independent path: real strided convolution).
def reference_forward(params, pixel_values, *, patch_size):
    P = patch_size
    patch = jax.lax.conv_general_dilated(
        pixel_values, params["conv_w"],
        window_strides=(P, P), padding="VALID",
        dimension_numbers=("NCHW", "OIHW", "NCHW"))
    patch = patch + params["conv_b"][None, :, None, None]
    B, O, nH, nW = patch.shape
    emb = patch.reshape(B, O, nH * nW).transpose(0, 2, 1)       # (B, NP, H)
    return emb + params["pos_emb"][None]


if __name__ == "__main__":
    # Small config consistent with the module.
    B = 2
    num_channels = 3
    image_size = 16
    patch_size = 4
    hidden_size = 32
    num_patches = (image_size // patch_size) ** 2               # 16

    key = jax.random.PRNGKey(0)
    k_param, k_x = jax.random.split(key)
    params = init_params(k_param, hidden_size, num_channels, image_size,
                         patch_size)
    pixel_values = jax.random.normal(
        k_x, (B, num_channels, image_size, image_size), jnp.float32)

    # tp=8 -> grid (B, 2): exercises the multi-tile pipelined path at demo size.
    out = kan_siglip_embeddings_forward(params, pixel_values,
                                        patch_size=patch_size, tp=8)
    out = jax.block_until_ready(out)

    ref = reference_forward(params, pixel_values, patch_size=patch_size)
    assert out.shape == (B, num_patches, hidden_size), out.shape
    np.testing.assert_allclose(np.asarray(out), np.asarray(ref),
                               rtol=1e-4, atol=1e-4)
    print("KERNEL_OK")
</pallas_src>

<mosaic_0001>
module attributes {stable_mosaic.version = 11 : i64} {
  func.func @_embed_kernel(%arg0: i32, %arg1: i32, %arg2: memref<1x8x48xf32, #tpu.memory_space<vmem>>, %arg3: memref<48x32xf32, #tpu.memory_space<vmem>>, %arg4: memref<1x32xf32, #tpu.memory_space<vmem>>, %arg5: memref<8x32xf32, #tpu.memory_space<vmem>>, %arg6: memref<1x8x32xf32, #tpu.memory_space<vmem>>) attributes {dimension_semantics = [#tpu.dimension_semantics<parallel>, #tpu.dimension_semantics<parallel>], iteration_bounds = array<i64: 2, 2>, scalar_prefetch = 0 : i64, scratch_operands = 0 : i64, tpu.core_type = #tpu.core_type<tc>, window_params = [{transform_indices = @transform_0, window_bounds = array<i64: 1, 8, 48>}, {pipeline_mode = #tpu.pipeline_mode<synchronous>, transform_indices = @transform_1, window_bounds = array<i64: 48, 32>}, {pipeline_mode = #tpu.pipeline_mode<synchronous>, transform_indices = @transform_2, window_bounds = array<i64: 1, 32>}, {transform_indices = @transform_3, window_bounds = array<i64: 8, 32>}, {transform_indices = @transform_4, window_bounds = array<i64: 1, 8, 32>}]} {
    %c0 = arith.constant 0 : index
    %c0_0 = arith.constant 0 : index
    %c0_1 = arith.constant 0 : index
    %0 = vector.load %arg2[%c0, %c0_0, %c0_1] : memref<1x8x48xf32, #tpu.memory_space<vmem>>, vector<1x8x48xf32>
    %1 = vector.shape_cast %0 : vector<1x8x48xf32> to vector<8x48xf32>
    %c0_2 = arith.constant 0 : index
    %c0_3 = arith.constant 0 : index
    %2 = vector.load %arg3[%c0_2, %c0_3] : memref<48x32xf32, #tpu.memory_space<vmem>>, vector<48x32xf32>
    %cst = arith.constant dense<0.000000e+00> : vector<8x32xf32>
    %3 = tpu.matmul %1, %2, %cst {dimension_numbers = #tpu.dot_dimension_numbers<[1], [0], [0], [1], [0, 0, 1, 1], [], []>} : vector<8x48xf32>, vector<48x32xf32>, vector<8x32xf32> -> vector<8x32xf32>
    %c0_4 = arith.constant 0 : index
    %c0_5 = arith.constant 0 : index
    %4 = vector.load %arg4[%c0_4, %c0_5] : memref<1x32xf32, #tpu.memory_space<vmem>>, vector<1x32xf32>
    %5 = vector.broadcast %4 : vector<1x32xf32> to vector<8x32xf32>
    %6 = arith.addf %3, %5 : vector<8x32xf32>
    %c0_6 = arith.constant 0 : index
    %c0_7 = arith.constant 0 : index
    %7 = vector.load %arg5[%c0_6, %c0_7] : memref<8x32xf32, #tpu.memory_space<vmem>>, vector<8x32xf32>
    %8 = arith.addf %6, %7 : vector<8x32xf32>
    %c0_8 = arith.constant 0 : index
    %c0_9 = arith.constant 0 : index
    %c0_10 = arith.constant 0 : index
    %9 = vector.load %arg6[%c0_8, %c0_9, %c0_10] : memref<1x8x32xf32, #tpu.memory_space<vmem>>, vector<1x8x32xf32>
    %10 = vector.shape_cast %9 : vector<1x8x32xf32> to vector<8x32xf32>
    %11 = vector.shape_cast %8 : vector<8x32xf32> to vector<1x8x32xf32>
    tpu.vector_store %arg6[%c0_8, %c0_9, %c0_10], %11 {strides = array<i32>} : memref<1x8x32xf32, #tpu.memory_space<vmem>>, vector<1x8x32xf32>,
    return
  }
  func.func @transform_0(%arg0: i32, %arg1: i32) -> (i32, i32, i32) {
    %c0_i32 = arith.constant 0 : i32
    %c0_i32_0 = arith.constant 0 : i32
    return %arg0, %arg1, %c0_i32 : i32, i32, i32
  }
  func.func @transform_1(%arg0: i32, %arg1: i32) -> (i32, i32) {
    %c0_i32 = arith.constant 0 : i32
    %c0_i32_0 = arith.constant 0 : i32
    %c0_i32_1 = arith.constant 0 : i32
    return %c0_i32, %c0_i32_0 : i32, i32
  }
  func.func @transform_2(%arg0: i32, %arg1: i32) -> (i32, i32) {
    %c0_i32 = arith.constant 0 : i32
    %c0_i32_0 = arith.constant 0 : i32
    %c0_i32_1 = arith.constant 0 : i32
    return %c0_i32, %c0_i32_0 : i32, i32
  }
  func.func @transform_3(%arg0: i32, %arg1: i32) -> (i32, i32) {
    %c0_i32 = arith.constant 0 : i32
    %c0_i32_0 = arith.constant 0 : i32
    return %arg1, %c0_i32 : i32, i32
  }
  func.func @transform_4(%arg0: i32, %arg1: i32) -> (i32, i32, i32) {
    %c0_i32 = arith.constant 0 : i32
    %c0_i32_0 = arith.constant 0 : i32
    return %arg0, %arg1, %c0_i32 : i32, i32, i32
  }
}

</mosaic_0001>

<bundles_post_ra>
// kernel: tpu_custom_call.1
= control target key start
LH: loop header
LB: loop body
LE: loop exit
PB: predicated region body
PF: predicated region fallthrough
CT: control target
= control target key end

     0   :  { %9 = vsyncpa [#allocation3], 0  ;;  %s739_s0 = inlined_call_operand.vmem [shape: f32[2,16,48], index: 0, kind: input, shape index: {}]   ;;  %s740_s1 = inlined_call_operand.vmem [shape: f32[48,32], index: 1, kind: input, shape index: {}]   ;;  %s741_s2 = inlined_call_operand.vmem [shape: f32[1,32], index: 2, kind: input, shape index: {}]   ;;  %s742_s3 = inlined_call_operand.vmem [shape: f32[16,32], index: 3, kind: input, shape index: {}]   ;;  %s743_s4 = inlined_call_operand.hbm [shape: f32[2,16,32], index: 4, kind: output, shape index: {}]  }
   0x1   :  { %11 = vsyncpa [#allocation3 + $0x1], 0  ;;  %s593_s15 = smov 0   ;;  %s595_s16 = smov 0  }
   0x2   :  { %s597_s17 = smov 0   ;;  %s599_s18 = smov 0  }
   0x3   :  { %s601_s19 = smov 0   ;;  %s603_s20 = smov 0  }
   0x4   :  { %s605_s21 = smov 0   ;;  %s607_s22 = smov 0  }
   0x5 LB: > { %s385_s23 = sadd.s32 4294967295, %s566_s22   ;;  %s386_s24 = sadd.s32 4294967294, %s566_s22   ;;  %s566_s22 = sphi %s607_s22, %s17_s22   ;;  %s562_s21 = sphi %s605_s21, %s758_s21   ;;  %s558_s20 = sphi %s603_s20, %s757_s20   ;;  %s554_s19 = sphi %s601_s19, %s756_s19   ;;  %s550_s18 = sphi %s599_s18, %s755_s18   ;;  %s546_s17 = sphi %s597_s17, %s754_s17   ;;  %s542_s16 = sphi %s595_s16, %s753_s16   ;;  %s538_s15 = sphi %s593_s15, %s752_s15  }
   0x6   : > { %s26_s25 = sadd.s32 1, %s558_s20  ;;  %s29_s26 = sadd.s32 1, %s562_s21 }
   0x7   : > { %p27_p0 = scmp.ge.s32.totalorder %s26_s25, 2  ;;  %p144_p1 = scmp.ne.s32.totalorder %s546_s17, %s542_s16 }
   0x8   : > { %p145_p2 = scmp.eq.s32.totalorder %s385_s23, 3  ;;  %p150_p5 = scmp.ne.s32.totalorder %s542_s16, %s538_s15 }
   0x9   : > { %s760_s25 = smov (%p27_p0, %s26_s25), 0  ;;  %s762_s26 = smov (!%p27_p0, %s29_s26), %s562_s21 }
   0xa   : > { %746 = sst [smem:[#allocation5_spill]] %s760_s25  ;;  %s130_s27 = ssub.s32 %s558_s20, %s760_s25 }
   0xb   : > { %p644_p3 = por %p145_p2, %p144_p1  ;;  %p31_p4 = scmp.ge.s32.totalorder %s762_s26, 2 }
   0xc   : > { %p151_p6 = scmp.eq.s32.totalorder %s386_s24, 3  ;;  %p389_p7 = scmp.ge.s32.totalorder %s566_s22, 1 }
   0xd   : > { %s764_s26 = smov (%p31_p4, %s762_s26), 0  ;;  %p193_p9 = scmp.lt.s32.totalorder %s566_s22, 5 }
   0xe   : > { %748 = sst [smem:[#allocation6_spill]] %s764_s26  ;;  %p653_p8 = por %p151_p6, %p150_p5 }
   0xf   : > { %s129_s30 = ssub.s32 %s562_s21, %s764_s26  ;;  %s134_s5 = sadd.s32 1, %s546_s17 }
  0x10   : > { %s131_s6 = sor.u32 %s130_s27, %s129_s30  ;;  %p194_p10 = pnand %p389_p7, %p193_p9 }
  0x11   : > { %p132_p11 = scmp.eq.s32.totalorder %s131_s6, 0  ;;  %p226_p12 = scmp.lt.s32.totalorder (!%p194_p10), %s554_s19, 1 }
  0x12   : > { %197 = sbr.rel (%p194_p10) target bundleno = 168 (0xa8), region = 36  ;;  %p228_p13 = scmp.lt.s32.totalorder (!%p194_p10), %s550_s18, 1 }
  0x13   : > { %s662_s7 = scalar_select %p132_p11, %s546_s17, %s134_s5  }
  0x14   : > { %s223_s24 = sand.u32 (!%p194_p10), 1, %s542_s16  }
  0x15   : > { %s390_s6 = sshll.u32 (!%p194_p10), %s223_s24, 3  ;;  %s278_s25 = scalar_lea.sflag (!%p194_p10), [#allocation3], %s223_s24 }
  0x17   : > { %v244_v0 = vld [vmem:[%s740_s1 + $0x28] sm:$0xff]  ;;  %v243_v1 = vld [vmem:[%s740_s1 + $0x20] sm:$0xff]  ;;  %v242_v2 = vld [vmem:[%s740_s1 + $0x18] sm:$0xff]  ;;  %s227_s14 = scalar_select %p226_p12, %s554_s19, 1  ;;  %vm249_vm0 = vcmask 392192   ;;  %vm275_vm1 = vcmask 261120  }
  0x18   : > { %263 = vmatpush.msra.mxu0 %v244_v0  ;;  %s229_s23 = scalar_select %p228_p13, %s550_s18, 1  ;;  %v241_v3 = vld [vmem:[%s740_s1 + $0x10] sm:$0xff]  ;;  %v240_v4 = vld [vmem:[%s740_s1 + $0x8] sm:$0xff]  ;;  %v239_v5 = vld [vmem:[%s740_s1] sm:$0xff] }
  0x19   : > { %s391_s30 = sshll.u32 %s227_s14, 1  ;;  %s396_s14 = sshll.u32 %s554_s19, 1  ;;  %v471_v7 = vld [vmem:[%s741_s2] ss:$0 sm:$0xff] }
  0x1a   : > { %264 = vmatpush.msra.mxu0 %v243_v1  ;;  %s231_s5 = sadd.s32 %s391_s30, %s229_s23  ;;  %s288_s27 = sadd.s32 %s550_s18, %s396_s14 }
  0x1b   : > { %s392_s9 = sshll.u32 %s231_s5, 3  ;;  %s393_s30 = sshll.u32 %s229_s23, 3 }
  0x1c   : > { %265 = vmatpush.msra.mxu0 %v242_v2  ;;  %s233_s12 = scalar_lea.vmem %s739_s0, %s392_s9  ;;  %s397_s5 = sshll.u32 %s288_s27, 3 }
  0x1d   : > { %v238_v6 = vld [vmem:[%s233_s12] sm:$0xff]  ;;  %s237_s10 = scalar_lea.vmem %s742_s3, %s393_s30  ;;  %s290_s12 = scalar_lea.hbm %s743_s4, %s397_s5 }
  0x1e   : > { %266 = vmatpush.msra.mxu0 %v241_v3  ;;  %v273_v9 = vld [vmem:[%s237_s10] sm:$0xff]  ;;  %s225_s19 = scalar_lea.vmem [#allocation2], %s390_s6  ;;  %s294_s23 = sshll.u32 %s290_s12, 4  ;;  %s295_s23 = int_to_ptr.hbm [resolvable:$true] %s294_s23 }
  0x1f   : > { %s292_s18 = sshll.u32 %s225_s19, 4  ;;  %s486_s14 = sshra.s32 %s295_s23, 4  ;;  %s293_s18 = int_to_ptr.vmem [resolvable:$true] %s292_s18  ;;  %s487_s14 = int_to_ptr.hbm [resolvable:$true] %s486_s14 }
  0x20   : > { %267 = vmatpush.msra.mxu0 %v240_v4  ;;  %s488_s27 = scalar_lea.hbm %s487_s14, 8  ;;  %s492_s6 = scalar_lea.hbm %s743_s4, 32 }
  0x21   : > { %p489_p0 = scmp.ne.s32.totalorder %s487_s14, %s488_s27  ;;  %p493_p4 = scmp.lt.s32.totalorder %s487_s14, %s743_s4 }
  0x22   : > { %268 = vmatpush.msra.mxu0 %v239_v5  ;;  %p494_p5 = scmp.lt.s32.totalorder %s492_s6, %s488_s27 }
  0x23   : > { %394 = vmatmul.msk.f32.vlgmr.msra.gmra.mxu0 %vm249_vm0, %v238_v6  ;;  %p490_p1 = pnand %p489_p0, %p644_p3 }
  0x24   : > { %p495_p6 = por %p494_p5, %p493_p4 }
  0x25   : > { %p491_p2 = pneg %p490_p1 }
  0x27   : > { %p496_p7 = pnand %p495_p6, %p491_p2 }
  0xa0   : > { %v270_v8 = vpop.f32.mrf.mxu0 }
  0xa1   : > { %v271_v10 = vadd.f32 %v471_v7, %v270_v8 }
  0xa3   : > { %v274_v11 = vadd.f32 %v273_v9, %v271_v10 }
  0xa5   : > { %276 = vst.msk [vmem:[%s225_s19] sm:$0xff] %vm275_vm1, %v274_v11 }
  0xa6   : > { %499 = shalt.err (!%p496_p7)
}
  0xa7   : > { %400 = dma.vmem_to_hbm [thread:$0]  (%p644_p3), %s293_s18, 128, %s295_s23, %s278_s25  }
  0xa8 PF: > { %p406_p9 = scmp.ge.s32.totalorder %s566_s22, 2  ;;  %s306_s24 = sand.u32 1, %s538_s15  }
  0xa9   : > { %s307_s9 = scalar_lea.sflag [#allocation3], %s306_s24 }
  0xaa   : > { %p403_p10 = pnand %p406_p9, %p653_p8 }
  0xac   : > { %p404_p11 = pneg %p403_p10 }
  0xae   : > { %533 = dma.done.wait (%p404_p11), %s307_s9, 128  }
  0xaf   : > { %535 = vsyncadd (%p404_p11), %s307_s9, 4294967168  ;;  %s17_s22 = sadd.s32 1, %s566_s22   ;;  %s750_s28 = sld [smem:[#allocation5_spill]] }
  0xb0   : > { %p14_p12 = scmp.ge.s32.totalorder %s17_s22, 6   ;;  %s751_s11 = sld [smem:[#allocation6_spill]] }
  0xb1   : > { %s752_s15 = smov %s542_s16  ;;  %s753_s16 = smov %s546_s17 }
  0xb2   : > { %s754_s17 = smov %s662_s7  ;;  %s755_s18 = smov %s558_s20 }
  0xb3   : > { %s756_s19 = smov %s562_s21  ;;  %16 = sbr.rel (!%p14_p12) target bundleno = 5 (0x5), region = 74 }
  0xb5   : > { %s757_s20 = smov %s750_s28 }
  0xb6   : > { %s758_s21 = smov %s751_s11 }
  0xb8   :  { %313 = vsyncpa [#allocation3], 1 }
  0xb9   :  { %315 = vsyncpa [#allocation3 + $0x1], 1 }

</bundles_post_ra>
